<compile_context>
chip_gen: v6e
topology: v6e:2x2x1
jax: 0.10.0
libtpu: 0.0.40
codegen_flags: <defaults>
</compile_context>

<pallas_src>
import jax
import jax.numpy as jnp
from jax.experimental import pallas as pl
from jax.experimental.pallas import tpu as pltpu

LANE = 128           # batch (lane-axis) tile granularity
MAX_TILE_B = 1024    # target batch-lane tile size per grid step
NEG_INF = -1e30      # bias for padded action rows -> exp() underflows to 0


def _round_up(n, m):
    return ((n + m - 1) // m) * m


def policy_mlp_kernel(x_ref, w1_ref, b1_ref, w2_ref, b2_ref, w3_ref, b3_ref,
                      out_ref):
    """Feature-major MLP + softmax.  Batch rides the 128-lane axis everywhere.

    x_ref : [num_inputs, T]    f32 (streamed per grid step)
    w*_ref: [out_pad, in_pad]  f32 (VMEM-resident, transposed weights)
    b*_ref: [out_pad, 1]       f32 (VMEM-resident)
    out   : [A_PAD, T]         f32 probabilities (padded action rows are 0)
    """
    x = x_ref[...]

    # Linear(num_inputs, 50) + ReLU                       -> [H1P, T]
    h1 = jnp.dot(w1_ref[...], x, preferred_element_type=jnp.float32) + b1_ref[...]
    h1 = jnp.maximum(h1, 0.0)

    # Linear(50, 20) + ReLU                               -> [H2P, T]
    h2 = jnp.dot(w2_ref[...], h1, preferred_element_type=jnp.float32) + b2_ref[...]
    h2 = jnp.maximum(h2, 0.0)

    # Linear(20, num_actions), actions padded to 8 sublanes -> [A_PAD, T]
    logits = jnp.dot(w3_ref[...], h2, preferred_element_type=jnp.float32) + b3_ref[...]

    # Numerically stable softmax over the (sublane) action axis.  Padded
    # action rows carry a -1e30 bias, so they lose the max and exp()
    # underflows to exactly 0, leaving the denominator clean.
    m = jnp.max(logits, axis=0, keepdims=True)
    e = jnp.exp(logits - m)
    denom = jnp.sum(e, axis=0, keepdims=True)
    out_ref[...] = (e / denom).astype(out_ref.dtype)    # exact division


def prepare_params(params):
    """One-time device-side parameter prep (hoisted out of the per-call path).

    Transposes weights to feature-major ([out, in]), zero-pads hidden dims to
    sublane multiples (50->56, 20->24) and pads the action axis to 8 sublanes
    (padded action biases = -1e30 so their probabilities are exactly 0).
    """
    w1, b1 = params["w1"], params["b1"]
    w2, b2 = params["w2"], params["b2"]
    w3, b3 = params["w3"], params["b3"]

    h1 = w1.shape[1]
    h2 = w2.shape[1]
    num_actions = w3.shape[1]

    h1p = _round_up(h1, 8)
    h2p = _round_up(h2, 8)
    a_pad = _round_up(max(num_actions, 8), 8)

    return {
        "w1t": jnp.pad(w1.T, ((0, h1p - h1), (0, 0))),                   # [h1p, in]
        "b1t": jnp.pad(b1.T, ((0, h1p - h1), (0, 0))),                   # [h1p, 1]
        "w2t": jnp.pad(w2.T, ((0, h2p - h2), (0, h1p - h1))),            # [h2p, h1p]
        "b2t": jnp.pad(b2.T, ((0, h2p - h2), (0, 0))),                   # [h2p, 1]
        "w3t": jnp.pad(w3.T, ((0, a_pad - num_actions), (0, h2p - h2))), # [a_pad, h2p]
        "b3t": jnp.pad(b3.T, ((0, a_pad - num_actions), (0, 0)),
                       constant_values=NEG_INF),                         # [a_pad, 1]
        "num_actions": num_actions,
    }


def _pick_tiling(batch):
    """Batch (lane-axis) tiling: multiples of 128, up to MAX_TILE_B per step,
    and an even number of >= 2 grid steps so the 'parallel' batch axis splits
    evenly across both v7x TensorCores (no effect on v5e/v6e single-TC)."""
    tile = MAX_TILE_B
    while tile > LANE and batch <= tile:
        tile //= 2
    n_tiles = pl.cdiv(batch, tile)
    if n_tiles % 2:
        n_tiles += 1
    return tile, n_tiles


def policy_network_forward(states, prepared):
    """Batched policy forward.

    states  : [B, num_inputs] f32 (already `transform`-ed observations).
    prepared: pytree from prepare_params().

    Returns feature-major probabilities of shape [A_PAD, Bp] where A_PAD is
    the padded action count (>= num_actions, multiple of 8) and Bp >= B is the
    padded batch.  Real probabilities live at [:num_actions, :B]; every padded
    entry is exactly 0, so a categorical sampler / log-prob gather can consume
    the padded block directly without a post-kernel slice (the slice roughly
    doubled HBM traffic for this op in the previous version).
    """
    w1t, b1t = prepared["w1t"], prepared["b1t"]
    w2t, b2t = prepared["w2t"], prepared["b2t"]
    w3t, b3t = prepared["w3t"], prepared["b3t"]

    B, num_inputs = states.shape
    a_pad = w3t.shape[0]

    tile_b, n_tiles = _pick_tiling(B)
    bp = tile_b * n_tiles

    # Feature-major input: batch on the lane axis.  Layout plumbing only —
    # [num_inputs, B] f32 is tiny compared to the old padded output stream.
    x_t = states.T
    if bp != B:
        x_t = jnp.pad(x_t, ((0, 0), (0, bp - B)))

    # Weights/biases: full-array blocks with constant index_maps stay
    # VMEM-resident across all grid steps; only the x and out tiles stream
    # (double-buffered) per step.
    resident = lambda a: pl.BlockSpec(a.shape, lambda i: (0,) * a.ndim)

    return pl.pallas_call(
        policy_mlp_kernel,
        out_shape=jax.ShapeDtypeStruct((a_pad, bp), jnp.float32),
        grid=(n_tiles,),
        in_specs=[
            pl.BlockSpec((num_inputs, tile_b), lambda i: (0, i)),  # x: streamed
            resident(w1t), resident(b1t),
            resident(w2t), resident(b2t),
            resident(w3t), resident(b3t),
        ],
        out_specs=pl.BlockSpec((a_pad, tile_b), lambda i: (0, i)),
        compiler_params=pltpu.CompilerParams(
            dimension_semantics=("parallel",)),   # megacore split on v7x
    )(x_t, w1t, b1t, w2t, b2t, w3t, b3t)


def init_params(key, num_inputs, num_actions):
    """Deterministic synthetic parameters (PyTorch Linear init ranges, stored
    as [in, out] weights / [1, out] biases to match the reference's x @ W)."""
    ks = jax.random.split(key, 6)

    def uniform(k, shape, fan_in):
        bound = 1.0 / jnp.sqrt(fan_in)
        return jax.random.uniform(k, shape, jnp.float32, -bound, bound)

    return {
        "w1": uniform(ks[0], (num_inputs, 50), num_inputs),
        "b1": uniform(ks[1], (1, 50), num_inputs),
        "w2": uniform(ks[2], (50, 20), 50),
        "b2": uniform(ks[3], (1, 20), 50),
        "w3": uniform(ks[4], (20, num_actions), 20),
        "b3": uniform(ks[5], (1, num_actions), 20),
    }


def _reference_forward(x, p):
    h = jnp.maximum(x @ p["w1"] + p["b1"], 0.0)
    h = jnp.maximum(h @ p["w2"] + p["b2"], 0.0)
    return jax.nn.softmax(h @ p["w3"] + p["b3"], axis=-1)


if __name__ == "__main__":
    num_inputs = 16
    num_actions = 4
    # Batched evaluation of many rollout states in one call; the module's
    # single-state forward (batch=1) is just the padded case of this path.
    batch = 512

    key = jax.random.PRNGKey(0)
    k_param, k_state = jax.random.split(key)

    params = init_params(k_param, num_inputs, num_actions)
    prepared = prepare_params(params)   # hoisted: runs once per policy, not per call

    # TODO(synk): self.transform is an arbitrary numpy-side preprocessing
    # callback with no fixed semantics; the kernel consumes already-transformed
    # float states directly.
    states = jax.random.normal(k_state, (batch, num_inputs), jnp.float32)

    probs_padded = policy_network_forward(states, prepared)
    probs_padded = jax.block_until_ready(probs_padded)

    a_pad = prepared["w3t"].shape[0]
    assert probs_padded.shape[0] == a_pad and probs_padded.shape[1] >= batch
    # Padded action rows must be exactly zero probability (clean for samplers).
    assert jnp.all(probs_padded[num_actions:, :] == 0.0)

    # Slice/transpose ONLY for verification against the [B, A] reference; an
    # RL consumer would index the padded feature-major block directly.
    probs = probs_padded[:num_actions, :batch].T
    assert probs.shape == (batch, num_actions)
    # Exact division in the softmax -> rows sum to 1 within f32 rounding.
    assert jnp.allclose(jnp.sum(probs, axis=1), 1.0, atol=1e-4)
    # Cross-check against a pure-JAX f32 reference.
    expected = _reference_forward(states, params)
    assert jnp.allclose(probs, expected, atol=1e-2)

    print("KERNEL_OK")
</pallas_src>

<mosaic_0001>
module attributes {stable_mosaic.version = 11 : i64} {
  func.func @policy_mlp_kernel(%arg0: i32, %arg1: memref<16x256xf32, #tpu.memory_space<vmem>>, %arg2: memref<56x16xf32, #tpu.memory_space<vmem>>, %arg3: memref<56x1xf32, #tpu.memory_space<vmem>>, %arg4: memref<24x56xf32, #tpu.memory_space<vmem>>, %arg5: memref<24x1xf32, #tpu.memory_space<vmem>>, %arg6: memref<8x24xf32, #tpu.memory_space<vmem>>, %arg7: memref<8x1xf32, #tpu.memory_space<vmem>>, %arg8: memref<8x256xf32, #tpu.memory_space<vmem>>) attributes {dimension_semantics = [#tpu.dimension_semantics<parallel>], iteration_bounds = array<i64: 2>, scalar_prefetch = 0 : i64, scratch_operands = 0 : i64, tpu.core_type = #tpu.core_type<tc>, window_params = [{transform_indices = @transform_0, window_bounds = array<i64: 16, 256>}, {pipeline_mode = #tpu.pipeline_mode<synchronous>, transform_indices = @transform_1, window_bounds = array<i64: 56, 16>}, {pipeline_mode = #tpu.pipeline_mode<synchronous>, transform_indices = @transform_2, window_bounds = array<i64: 56, 1>}, {pipeline_mode = #tpu.pipeline_mode<synchronous>, transform_indices = @transform_3, window_bounds = array<i64: 24, 56>}, {pipeline_mode = #tpu.pipeline_mode<synchronous>, transform_indices = @transform_4, window_bounds = array<i64: 24, 1>}, {pipeline_mode = #tpu.pipeline_mode<synchronous>, transform_indices = @transform_5, window_bounds = array<i64: 8, 24>}, {pipeline_mode = #tpu.pipeline_mode<synchronous>, transform_indices = @transform_6, window_bounds = array<i64: 8, 1>}, {transform_indices = @transform_7, window_bounds = array<i64: 8, 256>}]} {
    %c0 = arith.constant 0 : index
    %c0_0 = arith.constant 0 : index
    %0 = vector.load %arg1[%c0, %c0_0] : memref<16x256xf32, #tpu.memory_space<vmem>>, vector<16x256xf32>
    %c0_1 = arith.constant 0 : index
    %c0_2 = arith.constant 0 : index
    %1 = vector.load %arg2[%c0_1, %c0_2] : memref<56x16xf32, #tpu.memory_space<vmem>>, vector<56x16xf32>
    %cst = arith.constant dense<0.000000e+00> : vector<56x256xf32>
    %2 = tpu.matmul %1, %0, %cst {dimension_numbers = #tpu.dot_dimension_numbers<[1], [0], [0], [1], [0, 0, 1, 1], [], []>} : vector<56x16xf32>, vector<16x256xf32>, vector<56x256xf32> -> vector<56x256xf32>
    %c0_3 = arith.constant 0 : index
    %c0_4 = arith.constant 0 : index
    %3 = vector.load %arg3[%c0_3, %c0_4] : memref<56x1xf32, #tpu.memory_space<vmem>>, vector<56x1xf32>
    %4 = vector.broadcast %3 : vector<56x1xf32> to vector<56x256xf32>
    %5 = arith.addf %2, %4 : vector<56x256xf32>
    %cst_5 = arith.constant 0.000000e+00 : f32
    %6 = vector.broadcast %cst_5 : f32 to vector<56x256xf32>
    %7 = arith.maximumf %5, %6 : vector<56x256xf32>
    %c0_6 = arith.constant 0 : index
    %c0_7 = arith.constant 0 : index
    %8 = vector.load %arg4[%c0_6, %c0_7] : memref<24x56xf32, #tpu.memory_space<vmem>>, vector<24x56xf32>
    %cst_8 = arith.constant dense<0.000000e+00> : vector<24x256xf32>
    %9 = tpu.matmul %8, %7, %cst_8 {dimension_numbers = #tpu.dot_dimension_numbers<[1], [0], [0], [1], [0, 0, 1, 1], [], []>} : vector<24x56xf32>, vector<56x256xf32>, vector<24x256xf32> -> vector<24x256xf32>
    %c0_9 = arith.constant 0 : index
    %c0_10 = arith.constant 0 : index
    %10 = vector.load %arg5[%c0_9, %c0_10] : memref<24x1xf32, #tpu.memory_space<vmem>>, vector<24x1xf32>
    %11 = vector.broadcast %10 : vector<24x1xf32> to vector<24x256xf32>
    %12 = arith.addf %9, %11 : vector<24x256xf32>
    %cst_11 = arith.constant 0.000000e+00 : f32
    %13 = vector.broadcast %cst_11 : f32 to vector<24x256xf32>
    %14 = arith.maximumf %12, %13 : vector<24x256xf32>
    %c0_12 = arith.constant 0 : index
    %c0_13 = arith.constant 0 : index
    %15 = vector.load %arg6[%c0_12, %c0_13] : memref<8x24xf32, #tpu.memory_space<vmem>>, vector<8x24xf32>
    %cst_14 = arith.constant dense<0.000000e+00> : vector<8x256xf32>
    %16 = tpu.matmul %15, %14, %cst_14 {dimension_numbers = #tpu.dot_dimension_numbers<[1], [0], [0], [1], [0, 0, 1, 1], [], []>} : vector<8x24xf32>, vector<24x256xf32>, vector<8x256xf32> -> vector<8x256xf32>
    %c0_15 = arith.constant 0 : index
    %c0_16 = arith.constant 0 : index
    %17 = vector.load %arg7[%c0_15, %c0_16] : memref<8x1xf32, #tpu.memory_space<vmem>>, vector<8x1xf32>
    %18 = vector.broadcast %17 : vector<8x1xf32> to vector<8x256xf32>
    %19 = arith.addf %16, %18 : vector<8x256xf32>
    %cst_17 = arith.constant dense<0xFF800000> : vector<256xf32>
    %20 = vector.multi_reduction <maximumf>, %19, %cst_17 [0] : vector<8x256xf32> to vector<256xf32>
    %21 = vector.shape_cast %20 : vector<256xf32> to vector<1x256xf32>
    %22 = vector.broadcast %21 : vector<1x256xf32> to vector<8x256xf32>
    %23 = arith.subf %19, %22 : vector<8x256xf32>
    %24 = math.exp %23 : vector<8x256xf32>
    %cst_18 = arith.constant dense<0.000000e+00> : vector<256xf32>
    %25 = vector.multi_reduction <add>, %24, %cst_18 [0] : vector<8x256xf32> to vector<256xf32>
    %26 = vector.shape_cast %25 : vector<256xf32> to vector<1x256xf32>
    %27 = vector.broadcast %26 : vector<1x256xf32> to vector<8x256xf32>
    %28 = arith.divf %24, %27 : vector<8x256xf32>
    %c0_19 = arith.constant 0 : index
    %c0_20 = arith.constant 0 : index
    %29 = vector.load %arg8[%c0_19, %c0_20] : memref<8x256xf32, #tpu.memory_space<vmem>>, vector<8x256xf32>
    tpu.vector_store %arg8[%c0_19, %c0_20], %28 {strides = array<i32>} : memref<8x256xf32, #tpu.memory_space<vmem>>, vector<8x256xf32>,
    return
  }
  func.func @transform_0(%arg0: i32) -> (i32, i32) {
    %c0_i32 = arith.constant 0 : i32
    %c0_i32_0 = arith.constant 0 : i32
    return %c0_i32, %arg0 : i32, i32
  }
  func.func @transform_1(%arg0: i32) -> (i32, i32) {
    %c0_i32 = arith.constant 0 : i32
    %c0_i32_0 = arith.constant 0 : i32
    %c0_i32_1 = arith.constant 0 : i32
    return %c0_i32, %c0_i32_0 : i32, i32
  }
  func.func @transform_2(%arg0: i32) -> (i32, i32) {
    %c0_i32 = arith.constant 0 : i32
    %c0_i32_0 = arith.constant 0 : i32
    %c0_i32_1 = arith.constant 0 : i32
    return %c0_i32, %c0_i32_0 : i32, i32
  }
  func.func @transform_3(%arg0: i32) -> (i32, i32) {
    %c0_i32 = arith.constant 0 : i32
    %c0_i32_0 = arith.constant 0 : i32
    %c0_i32_1 = arith.constant 0 : i32
    return %c0_i32, %c0_i32_0 : i32, i32
  }
  func.func @transform_4(%arg0: i32) -> (i32, i32) {
    %c0_i32 = arith.constant 0 : i32
    %c0_i32_0 = arith.constant 0 : i32
    %c0_i32_1 = arith.constant 0 : i32
    return %c0_i32, %c0_i32_0 : i32, i32
  }
  func.func @transform_5(%arg0: i32) -> (i32, i32) {
    %c0_i32 = arith.constant 0 : i32
    %c0_i32_0 = arith.constant 0 : i32
    %c0_i32_1 = arith.constant 0 : i32
    return %c0_i32, %c0_i32_0 : i32, i32
  }
  func.func @transform_6(%arg0: i32) -> (i32, i32) {
    %c0_i32 = arith.constant 0 : i32
    %c0_i32_0 = arith.constant 0 : i32
    %c0_i32_1 = arith.constant 0 : i32
    return %c0_i32, %c0_i32_0 : i32, i32
  }
  func.func @transform_7(%arg0: i32) -> (i32, i32) {
    %c0_i32 = arith.constant 0 : i32
    %c0_i32_0 = arith.constant 0 : i32
    return %c0_i32, %arg0 : i32, i32
  }
}

</mosaic_0001>

<bundles_post_ra>
// kernel: tpu_custom_call.1
= control target key start
LH: loop header
LB: loop body
LE: loop exit
PB: predicated region body
PF: predicated region fallthrough
CT: control target
= control target key end

     0   :  { %12 = vsyncpa [#allocation4], 0  ;;  %s1183_s0 = inlined_call_operand.vmem [shape: f32[16,512], index: 0, kind: input, shape index: {}]   ;;  %s1184_s1 = inlined_call_operand.vmem [shape: f32[56,16], index: 1, kind: input, shape index: {}]   ;;  %s1185_s2 = inlined_call_operand.vmem [shape: f32[56,1], index: 2, kind: input, shape index: {}]   ;;  %s1186_s3 = inlined_call_operand.vmem [shape: f32[24,56], index: 3, kind: input, shape index: {}]   ;;  %s1187_s4 = inlined_call_operand.vmem [shape: f32[24,1], index: 4, kind: input, shape index: {}]   ;;  %s1188_s5 = inlined_call_operand.vmem [shape: f32[8,24], index: 5, kind: input, shape index: {}]   ;;  %s1189_s6 = inlined_call_operand.vmem [shape: f32[8,1], index: 6, kind: input, shape index: {}]   ;;  %s1190_s7 = inlined_call_operand.hbm [shape: f32[8,512], index: 7, kind: output, shape index: {}]  }
   0x1   :  { %14 = vsyncpa [#allocation4 + $0x1], 0  ;;  %s1002_s24 = smov 0   ;;  %s1004_s25 = smov 0  }
   0x2   :  { %s1006_s26 = smov 0   ;;  %s1008_s27 = smov 0  }
   0x3 LB: > { %s818_s28 = sadd.s32 4294967295, %s957_s27   ;;  %s819_s29 = sadd.s32 4294967294, %s957_s27   ;;  %s957_s27 = sphi %s1008_s27, %s1198_s27   ;;  %s953_s26 = sphi %s1006_s26, %s1197_s26   ;;  %s949_s25 = sphi %s1004_s25, %s1196_s25   ;;  %s945_s24 = sphi %s1002_s24, %s1195_s24  }
   0x4   : > { %s1025_s30 = sadd.s32 1, %s957_s27   ;;  %s27_s8 = sadd.s32 1, %s953_s26 }
   0x5   : > { %s24_s9 = ssub.s32 %s957_s27, %s1025_s30  ;;  %p34_p0 = scmp.ne.s32.totalorder %s953_s26, %s949_s25 }
   0x6   : > { %p25_p1 = scmp.eq.s32.totalorder %s24_s9, 0  ;;  %p35_p2 = scmp.eq.s32.totalorder %s957_s27, 0 }
   0x7   : > { %p190_p3 = scmp.eq.s32.totalorder %s818_s28, 1  ;;  %p195_p4 = scmp.ne.s32.totalorder %s949_s25, %s945_s24 }
   0x8   : > { %s1038_s10 = scalar_select %p25_p1, %s953_s26, %s27_s8  }
   0x9   : > { %p36_p5 = por %p35_p2, %p34_p0  ;;  %p1040_p6 = por %p190_p3, %p34_p0 }
   0xa   : > { %p196_p7 = scmp.eq.s32.totalorder %s819_s29, 1  ;;  %p1191_p9 = scmp.ge.s32.totalorder %s957_s27, 2 }
   0xc   : > { %p1044_p8 = por %p196_p7, %p195_p4  ;;  %230 = sbr.rel (%p1191_p9) target bundleno = 23 (0x17), region = 40 }
  0x11   : > { %233 = sbr.rel (!%p36_p5) target bundleno = 23 (0x17), region = 44  ;;  %s235_s13 = sand.u32 (%p36_p5), 1, %s953_s26  }
  0x12   : > { %s844_s14 = sshll.u32 (%p36_p5), %s957_s27, 4  ;;  %s822_s15 = sshll.u32 (%p36_p5), %s235_s13, 5 }
  0x13   : > { %s240_s18 = scalar_lea.vmem (%p36_p5), %s1183_s0, %s844_s14  ;;  %s237_s19 = scalar_lea.vmem (%p36_p5), [#allocation2], %s822_s15 }
  0x14   : > { %v253_v0 = vld [vmem:[%s240_s18] sm:$0xff] (%p36_p5)  ;;  %v255_v1 = vld [vmem:[%s240_s18 + $0x8] sm:$0xff] (%p36_p5) }
  0x15   : > { %v257_v2 = vld [vmem:[%s240_s18 + $0x20] sm:$0xff] (%p36_p5)  ;;  %254 = vst [vmem:[%s237_s19] sm:$0xff] (%p36_p5), %v253_v0  ;;  %256 = vst [vmem:[%s237_s19 + $0x8] sm:$0xff] (%p36_p5), %v255_v1  ;;  %v259_v3 = vld [vmem:[%s240_s18 + $0x28] sm:$0xff] (%p36_p5) }
  0x16   : > { %258 = vst [vmem:[%s237_s19 + $0x10] sm:$0xff] %v257_v2  ;;  %260 = vst [vmem:[%s237_s19 + $0x18] sm:$0xff] %v259_v3 }
  0x17 PF: > { %p825_p10 = scmp.ge.s32.totalorder %s957_s27, 1  ;;  %p265_p11 = scmp.lt.s32.totalorder %s957_s27, 3 }
  0x19   : > { %p266_p12 = pnand %p825_p10, %p265_p11 }
  0x1a   : > { %s1059_s20 = sand.u32 (!%p266_p12), 1, %s949_s25   ;;  %s845_s15 = sshll.u32 (!%p266_p12), %s818_s28, 8 }
  0x1b   : > { %269 = sbr.rel (%p266_p12) target bundleno = 757 (0x2f5), region = 67  ;;  %s826_s21 = sshll.u32 (!%p266_p12), %s1059_s20, 5 }
  0x1c   : > { %s274_s29 = scalar_lea.vmem (!%p266_p12), [#allocation2], %s826_s21  ;;  %s827_s14 = sshll.u32 (!%p266_p12), %s1059_s20, 4 }
  0x1d   : > { %s302_s16 = scalar_lea.vmem (!%p266_p12), [#allocation3], %s827_s14  ;;  %s752_s21 = scalar_lea.hbm (!%p266_p12), %s1190_s7, %s845_s15 }
  0x1e   : > { %s754_s17 = sshll.u32 (!%p266_p12), %s302_s16, 4  ;;  %s740_s22 = scalar_lea.sflag (!%p266_p12), [#allocation4], %s1059_s20  ;;  %s755_s17 = int_to_ptr.vmem [resolvable:$true] %s754_s17 }
  0x1f   : > { %s897_s23 = scalar_lea.vmem (!%p266_p12), %s755_s17, 256 }
  0x20   : > { %v959_v4 = vmov 0.0   ;;  %v960_v5 = vmov 0   ;;  %v322_v6 = vld [vmem:[%s1185_s2 + $0x30] sm:$0xff]  ;;  %v308_v7 = vld [vmem:[%s274_s29 + $0x18] sm:$0xff]  ;;  %v306_v9 = vld [vmem:[%s274_s29 + $0x8] sm:$0xff]  ;;  %vm358_vm0 = vcmask 130048   ;;  %p898_p13 = scmp.ne.s32.totalorder %s755_s17, %s897_s23 }
  0x21   : > { %444 = vmatprep.mubr.f32.mxu0 %v959_v4  ;;  %596 = vmatprep.mubr.f32.mxu1 %v959_v4  ;;  %v307_v8 = vld [vmem:[%s274_s29 + $0x10] sm:$0xff]  ;;  %v305_v10 = vld [vmem:[%s274_s29] sm:$0xff]  ;;  %v321_v11 = vld [vmem:[%s1185_s2 + $0x28] sm:$0xff]  ;;  %vm522_vm1 = vcmask 457728   ;;  %vm628_vm2 = vcmask 195584   ;;  %s961_s29 = smov [#allocation3]  }
  0x22   : > { %887 = vset.pattern.permute.xlu0 %v960_v5  ;;  %888 = vset.pattern.permute.xlu1 %v960_v5  ;;  %v320_v12 = vld [vmem:[%s1185_s2 + $0x20] sm:$0xff]  ;;  %v319_v14 = vld [vmem:[%s1185_s2 + $0x18] sm:$0xff]  ;;  %v318_v15 = vld [vmem:[%s1185_s2 + $0x10] sm:$0xff]  ;;  %p899_p0 = pnand %p898_p13, %p1040_p6  ;;  %s901_s28 = sshll.u32 %s961_s29, 4  ;;  %s902_s28 = int_to_ptr.vmem [resolvable:$false] %s901_s28 }
  0x23   : > { %355 = vperm.xlu0 %887, %v322_v6   ;;  %408 = vmatprep.subr.mxu0 %v308_v7  ;;  %v309_v13 = vld [vmem:[%s1184_s1] sm:$0xff]  ;;  %v310_v16 = vld [vmem:[%s1184_s1 + $0x8] sm:$0xff]  ;;  %v311_v19 = vld [vmem:[%s1184_s1 + $0x10] sm:$0xff]  ;;  %s903_s8 = scalar_lea.vmem %s902_s28, 512  ;;  %p904_p2 = scmp.lt.s32.totalorder %s755_s17, %s902_s28 }
  0x24   : > { %409 = vmatpush1.msra.mxu0 %v307_v8  ;;  %345 = vperm.xlu1 %888, %v320_v12   ;;  %v317_v17 = vld [vmem:[%s1185_s2 + $0x8] sm:$0xff]  ;;  %v316_v18 = vld [vmem:[%s1185_s2] sm:$0xff]  ;;  %v506_v20 = vld [vmem:[%s1187_s4 + $0x10] sm:$0xff]  ;;  %p900_p1 = pneg %p899_p0  ;;  %p905_p3 = scmp.lt.s32.totalorder %s903_s8, %s897_s23 }
  0x25   : > { %410 = vmatprep.subr.mxu0 %v306_v9  ;;  %v505_v21 = vld [vmem:[%s1187_s4 + $0x8] sm:$0xff]  ;;  %v312_v22 = vld [vmem:[%s1184_s1 + $0x18] sm:$0xff]  ;;  %v504_v23 = vld [vmem:[%s1187_s4] sm:$0xff] }
  0x26   : > { %411 = vmatpush1.msra.mxu0 %v305_v10  ;;  %v622_v24 = vld [vmem:[%s1189_s6] sm:$0xff]  ;;  %v314_v26 = vld [vmem:[%s1184_s1 + $0x28] sm:$0xff]  ;;  %v315_v27 = vld [vmem:[%s1184_s1 + $0x30] sm:$0xff]  ;;  %p906_p4 = por %p905_p3, %p904_p2 }
  0x27   : > { %350 = vperm.xlu0 %887, %v321_v11   ;;  %828 = vmatmul.mubr.msk.f32.vlgmr.msra.gmra.mxu0 %vm358_vm0, %v309_v13  ;;  %v313_v25 = vld [vmem:[%s1184_s1 + $0x20] sm:$0xff] }
  0x28   : > { %450 = vmatprep.mubr.f32.mxu0 %v959_v4  ;;  %340 = vperm.xlu1 %888, %v319_v14   ;;  %v501_v14 = vld [vmem:[%s1186_s3] sm:$0xff]  ;;  %p907_p5 = pnand %p906_p4, %p900_p1 }
  0x2b   : > { %335 = vperm.xlu0 %887, %v318_v15   ;;  %829 = vmatmul.mubr.msk.f32.gmra.mxu0 %vm358_vm0, %v310_v16  ;;  %v502_v15 = vld [vmem:[%s1186_s3 + $0x8] sm:$0xff]  ;;  %v503_v16 = vld [vmem:[%s1186_s3 + $0x10] sm:$0xff] }
  0x2c   : > { %456 = vmatprep.mubr.f32.mxu0 %v959_v4  ;;  %330 = vperm.xlu1 %888, %v317_v17  }
  0x2f   : > { %325 = vperm.xlu0 %887, %v316_v18   ;;  %830 = vmatmul.mubr.msk.f32.gmra.mxu0 %vm358_vm0, %v311_v19 }
  0x30   : > { %462 = vmatprep.mubr.f32.mxu0 %v959_v4  ;;  %519 = vperm.xlu1 %888, %v506_v20  }
  0x33   : > { %514 = vperm.xlu0 %887, %v505_v21   ;;  %831 = vmatmul.mubr.msk.f32.gmra.mxu0 %vm358_vm0, %v312_v22 }
  0x34   : > { %468 = vmatprep.mubr.f32.mxu0 %v959_v4  ;;  %509 = vperm.xlu1 %888, %v504_v23  }
  0x37   : > { %625 = vperm.xlu0 %887, %v622_v24   ;;  %832 = vmatmul.mubr.msk.f32.gmra.mxu0 %vm358_vm0, %v313_v25 }
  0x38   : > { %474 = vmatprep.mubr.f32.mxu0 %v959_v4 }
  0x3b   : > { %833 = vmatmul.mubr.msk.f32.gmra.mxu0 %vm358_vm0, %v314_v26 }
  0x3c   : > { %480 = vmatprep.mubr.f32.mxu0 %v959_v4 }
  0x3f   : > { %834 = vmatmul.mubr.msk.f32.gmra.mxu0 %vm358_vm0, %v315_v27 }
  0x9e   : > { %v356_v37 = vpop.permute.xlu0 %355 }
  0x9f   : > { %v346_v40 = vpop.permute.xlu1 %345 }
  0xa2   : > { %v351_v42 = vpop.permute.xlu0 %350 }
  0xa3   : > { %v341_v46 = vpop.permute.xlu1 %340 }
  0xa6   : > { %v336_v50 = vpop.permute.xlu0 %335 }
  0xa7   : > { %v331_v59 = vpop.permute.xlu1 %330 }
  0xaa   : > { %v326_v0 = vpop.permute.xlu0 %325 }
  0xab   : > { %v520_v20 = vpop.permute.xlu1 %519 }
  0xae   : > { %v515_v23 = vpop.permute.xlu0 %514 }
  0xe7   : > { %v446_v28 = vpop.f32.mrf.mxu0 }
  0xe8   : > { %v447_v8 = vadd.f32 %v446_v28, %v326_v0  ;;  %v510_v28 = vpop.permute.xlu1 %509 }
  0xe9   : > { %v448_v29 = vpop.f32.mrf.mxu0 }
  0xea   : > { %v449_v6 = vadd.f32 %v448_v29, %v326_v0  ;;  %v487_v13 = vmax.f32 %v447_v8, 0.0 }
  0xeb   : > { %v452_v30 = vpop.f32.mrf.mxu0 }
  0xec   : > { %v453_v3 = vadd.f32 %v452_v30, %v331_v59  ;;  %v488_v12 = vmax.f32 %v449_v6, 0.0 }
  0xed   : > { %v454_v31 = vpop.f32.mrf.mxu0 }
  0xee   : > { %v455_v1 = vadd.f32 %v454_v31, %v331_v59  ;;  %v489_v11 = vmax.f32 %v453_v3, 0.0 }
  0xef   : > { %v458_v32 = vpop.f32.mrf.mxu0 }
  0xf0   : > { %v459_v62 = vadd.f32 %v458_v32, %v336_v50  ;;  %v490_v10 = vmax.f32 %v455_v1, 0.0 }
  0xf1   : > { %v460_v33 = vpop.f32.mrf.mxu0 }
  0xf2   : > { %v461_v60 = vadd.f32 %v460_v33, %v336_v50  ;;  %v491_v9 = vmax.f32 %v459_v62, 0.0 }
  0xf3   : > { %v464_v34 = vpop.f32.mrf.mxu0 }
  0xf4   : > { %v465_v57 = vadd.f32 %v464_v34, %v341_v46  ;;  %v492_v7 = vmax.f32 %v461_v60, 0.0 }
  0xf5   : > { %v466_v35 = vpop.f32.mrf.mxu0 }
  0xf6   : > { %v467_v55 = vadd.f32 %v466_v35, %v341_v46  ;;  %v493_v5 = vmax.f32 %v465_v57, 0.0 }
  0xf7   : > { %v470_v36 = vpop.f32.mrf.mxu0 }
  0xf8   : > { %v471_v53 = vadd.f32 %v470_v36, %v346_v40  ;;  %v494_v2 = vmax.f32 %v467_v55, 0.0 }
  0xf9   : > { %v472_v38 = vpop.f32.mrf.mxu0 }
  0xfa   : > { %v473_v51 = vadd.f32 %v472_v38, %v346_v40  ;;  %v495_v63 = vmax.f32 %v471_v53, 0.0  ;;  %v626_v38 = vpop.permute.xlu0 %625 }
  0xfb   : > { %v476_v39 = vpop.f32.mrf.mxu0 }
  0xfc   : > { %v477_v49 = vadd.f32 %v476_v39, %v351_v42  ;;  %v496_v61 = vmax.f32 %v473_v51, 0.0 }
  0xfd   : > { %v478_v41 = vpop.f32.mrf.mxu0 }
  0xfe   : > { %v479_v47 = vadd.f32 %v478_v41, %v351_v42  ;;  %v497_v58 = vmax.f32 %v477_v49, 0.0 }
  0xff   : > { %v482_v43 = vpop.f32.mrf.mxu0 }
 0x100   : > { %v483_v44 = vadd.f32 %v482_v43, %v356_v37  ;;  %v498_v56 = vmax.f32 %v479_v47, 0.0 }
 0x101   : > { %v484_v45 = vpop.f32.mrf.mxu0 }
 0x102   : > { %v485_v48 = vadd.f32 %v484_v45, %v356_v37  ;;  %v499_v54 = vmax.f32 %v483_v44, 0.0  ;;  %v621_v37 = vld [vmem:[%s1188_s5] sm:$0xff] }
 0x104   : > { %v500_v52 = vmax.f32 %v485_v48, 0.0 }
 0x106   : > { %550 = vmatprep.subr.mxu1 %v500_v52 }
 0x107   : > { %551 = vmatpush1.msra.mxu1 %v499_v54 }
 0x108   : > { %552 = vmatprep.subr.mxu1 %v498_v56 }
 0x109   : > { %553 = vmatpush1.msra.mxu1 %v497_v58 }
 0x10a   : > { %554 = vmatprep.subr.mxu1 %v496_v61 }
 0x10b   : > { %555 = vmatpush1.msra.mxu1 %v495_v63 }
 0x10c   : > { %556 = vmatprep.subr.mxu1 %v494_v2 }
 0x10d   : > { %557 = vmatpush1.msra.mxu1 %v493_v5 }
 0x10e   : > { %558 = vmatprep.subr.mxu1 %v492_v7 }
 0x10f   : > { %559 = vmatpush1.msra.mxu1 %v491_v9 }
 0x110   : > { %560 = vmatprep.subr.mxu1 %v490_v10 }
 0x111   : > { %561 = vmatpush1.msra.mxu1 %v489_v11 }
 0x112   : > { %562 = vmatprep.subr.mxu1 %v488_v12 }
 0x113   : > { %563 = vmatpush1.msra.mxu1 %v487_v13 }
 0x114   : > { %835 = vmatmul.mubr.msk.f32.vlgmr.msra.gmra.mxu1 %vm522_vm1, %v501_v14 }
 0x115   : > { %602 = vmatprep.mubr.f32.mxu1 %v959_v4 }
 0x118   : > { %836 = vmatmul.mubr.msk.f32.gmra.mxu1 %vm522_vm1, %v502_v15 }
 0x119   : > { %608 = vmatprep.mubr.f32.mxu1 %v959_v4 }
 0x11c   : > { %837 = vmatmul.mubr.msk.f32.gmra.mxu1 %vm522_vm1, %v503_v16 }
 0x11d   : > { %696 = vmatprep.mubr.f32.mxu1 %v959_v4 }
 0x1d4   : > { %v598_v17 = vpop.f32.mrf.mxu1 }
 0x1d5   : > { %v599_v32 = vadd.f32 %v598_v17, %v510_v28 }
 0x1d6   : > { %v600_v18 = vpop.f32.mrf.mxu1 }
 0x1d7   : > { %v601_v30 = vadd.f32 %v600_v18, %v510_v28  ;;  %v615_v36 = vmax.f32 %v599_v32, 0.0 }
 0x1d8   : > { %v604_v19 = vpop.f32.mrf.mxu1 }
 0x1d9   : > { %v605_v29 = vadd.f32 %v604_v19, %v515_v23  ;;  %v616_v35 = vmax.f32 %v601_v30, 0.0 }
 0x1da   : > { %v606_v21 = vpop.f32.mrf.mxu1 }
 0x1db   : > { %v607_v26 = vadd.f32 %v606_v21, %v515_v23  ;;  %v617_v4 = vmax.f32 %v605_v29, 0.0 }
 0x1dc   : > { %v610_v22 = vpop.f32.mrf.mxu1 }
 0x1dd   : > { %v611_v24 = vadd.f32 %v610_v22, %v520_v20  ;;  %v618_v34 = vmax.f32 %v607_v26, 0.0 }
 0x1de   : > { %v612_v25 = vpop.f32.mrf.mxu1 }
 0x1df   : > { %v613_v27 = vadd.f32 %v612_v25, %v520_v20  ;;  %v619_v33 = vmax.f32 %v611_v24, 0.0 }
 0x1e1   : > { %v620_v31 = vmax.f32 %v613_v27, 0.0 }
 0x1e3   : > { %658 = vmatprep.subr.mxu1 %v620_v31 }
 0x1e4   : > { %659 = vmatpush1.msra.mxu1 %v619_v33 }
 0x1e5   : > { %660 = vmatprep.subr.mxu1 %v618_v34 }
 0x1e6   : > { %661 = vmatpush1.msra.mxu1 %v617_v4 }
 0x1e7   : > { %662 = vmatprep.subr.mxu1 %v616_v35 }
 0x1e8   : > { %663 = vmatpush1.msra.mxu1 %v615_v36 }
 0x1e9   : > { %838 = vmatmul.mubr.msk.f32.vlgmr.msra.gmra.mxu1 %vm628_vm2, %v621_v37 }
 0x2a9   : > { %v698_v39 = vpop.f32.mrf.mxu1 }
 0x2aa   : > { %v699_v40 = vadd.f32 %v698_v39, %v626_v38 }
 0x2ab   : > { %v700_v41 = vpop.f32.mrf.mxu1 }
 0x2ac   : > { %v703_v42 = vrot.slane %v699_v40, 4  ;;  %v701_v43 = vadd.f32 %v700_v41, %v626_v38 }
 0x2ae   : > { %v704_v44 = vmax.f32 %v699_v40, %v703_v42  ;;  %v709_v45 = vrot.slane %v701_v43, 4 }
 0x2b0   : > { %v705_v46 = vrot.slane %v704_v44, 2  ;;  %v710_v47 = vmax.f32 %v701_v43, %v709_v45 }
 0x2b2   : > { %v706_v48 = vmax.f32 %v704_v44, %v705_v46  ;;  %v711_v49 = vrot.slane %v710_v47, 2 }
 0x2b4   : > { %v707_v50 = vrot.slane %v706_v48, 1  ;;  %v712_v51 = vmax.f32 %v710_v47, %v711_v49 }
 0x2b6   : > { %v708_v52 = vmax.f32 %v706_v48, %v707_v50  ;;  %v713_v53 = vrot.slane %v712_v51, 1 }
 0x2b8   : > { %v715_v54 = vsub.f32 %v699_v40, %v708_v52  ;;  %v714_v55 = vmax.f32 %v712_v51, %v713_v53 }
 0x2ba   : > { %v717_v56 = vmul.f32 1.442695, %v715_v54  ;;  %v716_v57 = vsub.f32 %v701_v43, %v714_v55 }
 0x2bc   : > { %889 = vpow2.f32 %v717_v56  ;;  %v719_v58 = vmul.f32 1.442695, %v716_v57 }
 0x2be   : > { %891 = vpow2.f32 %v719_v58 }
 0x2c9   : > { %v890_v59 = vpop.eup %889 }
 0x2ca   : > { %v721_v60 = vrot.slane %v890_v59, 4 }
 0x2cb   : > { %v892_v61 = vpop.eup %891 }
 0x2cc   : > { %v722_v62 = vadd.f32 %v890_v59, %v721_v60  ;;  %v727_v63 = vrot.slane %v892_v61, 4 }
 0x2ce   : > { %v723_v0 = vrot.slane %v722_v62, 2  ;;  %v728_v1 = vadd.f32 %v892_v61, %v727_v63 }
 0x2d0   : > { %v724_v2 = vadd.f32 %v723_v0, %v722_v62  ;;  %v729_v3 = vrot.slane %v728_v1, 2 }
 0x2d2   : > { %v725_v5 = vrot.slane %v724_v2, 1  ;;  %v730_v6 = vadd.f32 %v729_v3, %v728_v1 }
 0x2d4   : > { %v726_v7 = vadd.f32 %v725_v5, %v724_v2  ;;  %v731_v8 = vrot.slane %v730_v6, 1 }
 0x2d6   : > { %v732_v9 = vadd.f32 %v731_v8, %v730_v6  ;;  %893 = vrcp.f32 %v726_v7 }
 0x2d8   : > { %895 = vrcp.f32 %v732_v9 }
 0x2e3   : > { %v894_v10 = vpop.eup %893 }
 0x2e4   : > { %v734_v11 = vmul.f32 %v894_v10, %v890_v59 }
 0x2e5   : > { %v896_v12 = vpop.eup %895 }
 0x2e6   : > { %v736_v13 = vmul.f32 %v896_v12, %v892_v61  ;;  %737 = vst [vmem:[%s302_s16] sm:$0xff] %v734_v11 }
 0x2e8   : > { %738 = vst [vmem:[%s302_s16 + $0x8] sm:$0xff] %v736_v13 }
 0x2e9   : > { %910 = shalt.err (!%p907_p5)
}
 0x2ea   : > { %s911_s9 = scalar_lea.hbm %s752_s21, 256  ;;  %s915_s14 = scalar_lea.hbm %s1190_s7, 512 }
 0x2eb   : > { %p912_p7 = scmp.ne.s32.totalorder %s752_s21, %s911_s9  ;;  %p916_p12 = scmp.lt.s32.totalorder %s752_s21, %s1190_s7 }
 0x2ec   : > { %p917_p13 = scmp.lt.s32.totalorder %s915_s14, %s911_s9 }
 0x2ed   : > { %p913_p10 = pnand %p912_p7, %p1040_p6 }
 0x2ee   : > { %p918_p0 = por %p917_p13, %p916_p12 }
 0x2ef   : > { %p914_p11 = pneg %p913_p10 }
 0x2f1   : > { %p919_p9 = pnand %p918_p0, %p914_p11 }
 0x2f3   : > { %922 = shalt.err (!%p919_p9)
}
 0x2f4   : > { %846 = dma.vmem_to_hbm [thread:$0]  (%p1040_p6), %s755_s17, 256, %s752_s21, %s740_s22  }
 0x2f5 PF: > { %s766_s18 = sand.u32 1, %s945_s24   ;;  %p1194_p1 = scmp.ge.s32.totalorder %s957_s27, 2 }
 0x2f6   : > { %s767_s19 = scalar_lea.sflag [#allocation4], %s766_s18 }
 0x2f7   : > { %p849_p2 = pnand %p1194_p1, %p1044_p8 }
 0x2f9   : > { %p850_p3 = pneg %p849_p2 }
 0x2fb   : > { %940 = dma.done.wait (%p850_p3), %s767_s19, 256  }
 0x2fc   : > { %942 = vsyncadd (%p850_p3), %s767_s19, 4294967040  ;;  %p17_p9 = scmp.ge.s32.totalorder %s1025_s30, 4   ;;  %s1195_s24 = smov %s949_s25 }
 0x2fd   : > { %s1196_s25 = smov %s953_s26  ;;  %s1197_s26 = smov %s1038_s10 }
 0x2fe   : > { %s1198_s27 = smov %s1025_s30  ;;  %19 = sbr.rel (!%p17_p9) target bundleno = 3 (0x3), region = 111 }
 0x303   :  { %772 = vsyncpa [#allocation4], 1 }
 0x304   :  { %774 = vsyncpa [#allocation4 + $0x1], 1 }

</bundles_post_ra>
